<compile_context>
chip_gen: v5e
topology: v5e:2x2
jax: 0.10.0
libtpu: 0.0.40
codegen_flags: <defaults>
</compile_context>

<pallas_src>
import functools

import jax
import jax.numpy as jnp
from jax.experimental import pallas as pl
from jax.experimental.pallas import tpu as pltpu


def nbeats_kernel(x_ref, w_ref, b_ref, y_ref, *, num_total_blocks: int):
    """Whole NBEATS forward in one kernel invocation (everything fits VMEM).

    x_ref : (Bp, P)      input, batch padded to 8 sublanes, lanes padded to P=128
    w_ref : (NB, P, P)   fused per-block weight (rows N..P and cols T+H..P zero)
    b_ref : (NB, P)      fused per-block bias   (cols T+H..P zero)
    y_ref : (Bp, P)      lane-dense accumulator slab; wrapper slices forecast cols
    """
    x = x_ref[...]                                       # (Bp, P) f32
    acc = jnp.zeros(y_ref.shape, jnp.float32)            # (Bp, P)

    for blk in range(num_total_blocks):                  # static unrolled (NB=8)
        # One fused matmul per block: hidden^5 + backcast|forecast folded offline.
        out = jnp.dot(x, w_ref[blk], preferred_element_type=jnp.float32)
        out = out + b_ref[pl.ds(blk, 1), :]              # (1, P) broadcast add
        # Residual update over the FULL slab: lanes T..P of x become junk but
        # never feed back because rows N..P of every Wblk are zero.
        x = x - out
        acc = acc + out                                   # forecast cols read later

    y_ref[...] = acc                                      # unmasked (Bp, P) store


def init_params(key, num_total_blocks, N, T, H):
    """Deterministic PyTorch-default-style init (uniform +-1/sqrt(fan_in)).

    Returns raw per-block params in (in, out) layout with 2D biases:
      W (NB,N,N), b (NB,N), Wb (NB,N,T), bb (NB,T), Wf (NB,N,H), bf (NB,H)
    """
    def linear(k, fan_in, fan_out):
        k1, k2 = jax.random.split(k)
        bound = 1.0 / float(fan_in) ** 0.5
        w_pt = jax.random.uniform(k1, (fan_out, fan_in), jnp.float32,
                                  -bound, bound)          # PyTorch (out, in)
        bias = jax.random.uniform(k2, (fan_out,), jnp.float32, -bound, bound)
        return w_pt.T, bias                               # kernel uses (in, out)

    Ws, bs, Wbs, bbs, Wfs, bfs = [], [], [], [], [], []
    for i in range(num_total_blocks):
        k = jax.random.fold_in(key, i)
        k1, k2, k3 = jax.random.split(k, 3)
        w, bh = linear(k1, N, N)
        wb, bbk = linear(k2, N, T)
        wf, bfk = linear(k3, N, H)
        Ws.append(w);   bs.append(bh)
        Wbs.append(wb); bbs.append(bbk)
        Wfs.append(wf); bfs.append(bfk)
    return (jnp.stack(Ws), jnp.stack(bs),
            jnp.stack(Wbs), jnp.stack(bbs),
            jnp.stack(Wfs), jnp.stack(bfs))


def prepare_params(raw, lane_pad=128):
    """Algebraic folding done once, outside the kernel (exact algebra, f32):

       h5   = x @ W^5 + b @ (W^4+W^3+W^2+W+I)
       out  = h5 @ [Wb | Wf | 0] + [bb | bf | 0]
            = x @ Wblk + bblk

    with Wblk K-dim zero-padded to P=128 lanes so the kernel stays lane-dense.
    """
    W, b, Wb, bb, Wf, bf = raw
    NB, N, _ = W.shape
    T = Wb.shape[-1]
    H = Wf.shape[-1]

    W2 = jnp.matmul(W, W)
    W3 = jnp.matmul(W2, W)
    W4 = jnp.matmul(W2, W2)
    W5 = jnp.matmul(W4, W)
    eye = jnp.broadcast_to(jnp.eye(N, dtype=jnp.float32), (NB, N, N))
    S = eye + W + W2 + W3 + W4
    b_eff = jnp.einsum('bn,bnm->bm', b, S)                # (NB, N)

    P = ((T + H + lane_pad - 1) // lane_pad) * lane_pad
    Wbf = jnp.zeros((NB, N, P), jnp.float32)
    Wbf = Wbf.at[:, :, :T].set(Wb).at[:, :, T:T + H].set(Wf)
    bbf = jnp.zeros((NB, P), jnp.float32)
    bbf = bbf.at[:, :T].set(bb).at[:, T:T + H].set(bf)

    Wblk = jnp.matmul(W5, Wbf)                            # (NB, N, P)
    bblk = jnp.einsum('bn,bnp->bp', b_eff, Wbf) + bbf     # (NB, P)

    # Zero-pad the contraction dim to P so x / out / residual stay 128-lane dense.
    Wblk_pad = jnp.zeros((NB, P, P), jnp.float32).at[:, :N, :].set(Wblk)
    return Wblk_pad, bblk, T, H


def nbeats_forward(x, prepped):
    """x: (B, 1, N) -> final_y_hat: (B, 1, H)."""
    Wblk, bblk, T, H = prepped
    B = x.shape[0]
    N = x.shape[-1]
    # The residual x - x_hat (as in the PyTorch reference) needs T == N.
    assert T == N, "x - x_hat requires seq_t_steps == num_neurons"
    NB, P, _ = Wblk.shape
    Bp = ((B + 7) // 8) * 8                               # sublane-align batch

    x2 = x.reshape(B, N).astype(jnp.float32)
    x2 = jnp.pad(x2, ((0, Bp - B), (0, P - N)))           # (Bp, P) lane-dense

    vmem = pl.BlockSpec(memory_space=pltpu.MemorySpace.VMEM)
    y_full = pl.pallas_call(
        functools.partial(nbeats_kernel, num_total_blocks=NB),
        out_shape=jax.ShapeDtypeStruct((Bp, P), jnp.float32),
        in_specs=[vmem] * 3,
        out_specs=vmem,
    )(x2, Wblk, bblk)

    # Slice the real batch rows and the forecast columns of the lane-dense slab.
    return y_full[:B, T:T + H].reshape(B, 1, H)


def reference_forward(x, raw):
    """Pure-JAX mirror of the PyTorch forward (structure-faithful, no folding)."""
    W, b, Wb, bb, Wf, bf = raw
    NB = W.shape[0]
    H = Wf.shape[-1]
    B = x.shape[0]
    x2 = x.reshape(B, -1).astype(jnp.float32)
    y = jnp.zeros((B, H), jnp.float32)
    for blk in range(NB):
        h = x2
        for _ in range(5):                                # 4 hidden + params pass
            h = h @ W[blk] + b[blk]
        x_hat = h @ Wb[blk] + bb[blk]
        y_hat = h @ Wf[blk] + bf[blk]
        x2 = x2 - x_hat
        y = y + y_hat
    return y.reshape(B, 1, H)


if __name__ == "__main__":
    key = jax.random.PRNGKey(0)

    B = 2
    num_neurons = 32
    seq_t_steps = 32          # must equal num_neurons for x - x_hat (as in reference)
    horizon = 8
    num_stacks, num_blocks = 2, 4
    num_total_blocks = num_stacks * num_blocks

    raw = init_params(key, num_total_blocks, num_neurons, seq_t_steps, horizon)
    prepped = prepare_params(raw)
    x = jax.random.normal(jax.random.fold_in(key, 12345),
                          (B, 1, num_neurons), jnp.float32)

    out = nbeats_forward(x, prepped)
    out = jax.block_until_ready(out)

    ref = reference_forward(x, raw)
    assert out.shape == (B, 1, horizon)
    assert jnp.allclose(out, ref, rtol=1e-3, atol=1e-3), "mismatch vs JAX reference"

    print("KERNEL_OK")
</pallas_src>

<mosaic_0001>
module attributes {stable_mosaic.version = 11 : i64} {
  func.func @nbeats_kernel(%arg0: memref<8x128xf32, #tpu.memory_space<vmem>>, %arg1: memref<8x128x128xf32, #tpu.memory_space<vmem>>, %arg2: memref<8x128xf32, #tpu.memory_space<vmem>>, %arg3: memref<8x128xf32, #tpu.memory_space<vmem>>) attributes {dimension_semantics = [], scalar_prefetch = 0 : i64, scratch_operands = 0 : i64, tpu.core_type = #tpu.core_type<tc>} {
    %c0 = arith.constant 0 : index
    %c0_0 = arith.constant 0 : index
    %0 = vector.load %arg0[%c0, %c0_0] : memref<8x128xf32, #tpu.memory_space<vmem>>, vector<8x128xf32>
    %cst = arith.constant 0.000000e+00 : f32
    %1 = vector.broadcast %cst : f32 to vector<8x128xf32>
    %c0_1 = arith.constant 0 : index
    %c0_2 = arith.constant 0 : index
    %c0_3 = arith.constant 0 : index
    %2 = vector.load %arg1[%c0_1, %c0_2, %c0_3] : memref<8x128x128xf32, #tpu.memory_space<vmem>>, vector<1x128x128xf32>
    %3 = vector.shape_cast %2 : vector<1x128x128xf32> to vector<128x128xf32>
    %cst_4 = arith.constant dense<0.000000e+00> : vector<8x128xf32>
    %4 = tpu.matmul %0, %3, %cst_4 {dimension_numbers = #tpu.dot_dimension_numbers<[1], [0], [0], [1], [0, 0, 1, 1], [], []>} : vector<8x128xf32>, vector<128x128xf32>, vector<8x128xf32> -> vector<8x128xf32>
    %c0_5 = arith.constant 0 : index
    %c0_6 = arith.constant 0 : index
    %5 = vector.load %arg2[%c0_5, %c0_6] : memref<8x128xf32, #tpu.memory_space<vmem>>, vector<1x128xf32>
    %6 = vector.broadcast %5 : vector<1x128xf32> to vector<8x128xf32>
    %7 = arith.addf %4, %6 : vector<8x128xf32>
    %8 = arith.subf %0, %7 : vector<8x128xf32>
    %9 = arith.addf %1, %7 : vector<8x128xf32>
    %c1 = arith.constant 1 : index
    %c0_7 = arith.constant 0 : index
    %c0_8 = arith.constant 0 : index
    %10 = vector.load %arg1[%c1, %c0_7, %c0_8] : memref<8x128x128xf32, #tpu.memory_space<vmem>>, vector<1x128x128xf32>
    %11 = vector.shape_cast %10 : vector<1x128x128xf32> to vector<128x128xf32>
    %cst_9 = arith.constant dense<0.000000e+00> : vector<8x128xf32>
    %12 = tpu.matmul %8, %11, %cst_9 {dimension_numbers = #tpu.dot_dimension_numbers<[1], [0], [0], [1], [0, 0, 1, 1], [], []>} : vector<8x128xf32>, vector<128x128xf32>, vector<8x128xf32> -> vector<8x128xf32>
    %c1_10 = arith.constant 1 : index
    %c0_11 = arith.constant 0 : index
    %13 = vector.load %arg2[%c1_10, %c0_11] : memref<8x128xf32, #tpu.memory_space<vmem>>, vector<1x128xf32>
    %14 = vector.broadcast %13 : vector<1x128xf32> to vector<8x128xf32>
    %15 = arith.addf %12, %14 : vector<8x128xf32>
    %16 = arith.subf %8, %15 : vector<8x128xf32>
    %17 = arith.addf %9, %15 : vector<8x128xf32>
    %c2 = arith.constant 2 : index
    %c0_12 = arith.constant 0 : index
    %c0_13 = arith.constant 0 : index
    %18 = vector.load %arg1[%c2, %c0_12, %c0_13] : memref<8x128x128xf32, #tpu.memory_space<vmem>>, vector<1x128x128xf32>
    %19 = vector.shape_cast %18 : vector<1x128x128xf32> to vector<128x128xf32>
    %cst_14 = arith.constant dense<0.000000e+00> : vector<8x128xf32>
    %20 = tpu.matmul %16, %19, %cst_14 {dimension_numbers = #tpu.dot_dimension_numbers<[1], [0], [0], [1], [0, 0, 1, 1], [], []>} : vector<8x128xf32>, vector<128x128xf32>, vector<8x128xf32> -> vector<8x128xf32>
    %c2_15 = arith.constant 2 : index
    %c0_16 = arith.constant 0 : index
    %21 = vector.load %arg2[%c2_15, %c0_16] : memref<8x128xf32, #tpu.memory_space<vmem>>, vector<1x128xf32>
    %22 = vector.broadcast %21 : vector<1x128xf32> to vector<8x128xf32>
    %23 = arith.addf %20, %22 : vector<8x128xf32>
    %24 = arith.subf %16, %23 : vector<8x128xf32>
    %25 = arith.addf %17, %23 : vector<8x128xf32>
    %c3 = arith.constant 3 : index
    %c0_17 = arith.constant 0 : index
    %c0_18 = arith.constant 0 : index
    %26 = vector.load %arg1[%c3, %c0_17, %c0_18] : memref<8x128x128xf32, #tpu.memory_space<vmem>>, vector<1x128x128xf32>
    %27 = vector.shape_cast %26 : vector<1x128x128xf32> to vector<128x128xf32>
    %cst_19 = arith.constant dense<0.000000e+00> : vector<8x128xf32>
    %28 = tpu.matmul %24, %27, %cst_19 {dimension_numbers = #tpu.dot_dimension_numbers<[1], [0], [0], [1], [0, 0, 1, 1], [], []>} : vector<8x128xf32>, vector<128x128xf32>, vector<8x128xf32> -> vector<8x128xf32>
    %c3_20 = arith.constant 3 : index
    %c0_21 = arith.constant 0 : index
    %29 = vector.load %arg2[%c3_20, %c0_21] : memref<8x128xf32, #tpu.memory_space<vmem>>, vector<1x128xf32>
    %30 = vector.broadcast %29 : vector<1x128xf32> to vector<8x128xf32>
    %31 = arith.addf %28, %30 : vector<8x128xf32>
    %32 = arith.subf %24, %31 : vector<8x128xf32>
    %33 = arith.addf %25, %31 : vector<8x128xf32>
    %c4 = arith.constant 4 : index
    %c0_22 = arith.constant 0 : index
    %c0_23 = arith.constant 0 : index
    %34 = vector.load %arg1[%c4, %c0_22, %c0_23] : memref<8x128x128xf32, #tpu.memory_space<vmem>>, vector<1x128x128xf32>
    %35 = vector.shape_cast %34 : vector<1x128x128xf32> to vector<128x128xf32>
    %cst_24 = arith.constant dense<0.000000e+00> : vector<8x128xf32>
    %36 = tpu.matmul %32, %35, %cst_24 {dimension_numbers = #tpu.dot_dimension_numbers<[1], [0], [0], [1], [0, 0, 1, 1], [], []>} : vector<8x128xf32>, vector<128x128xf32>, vector<8x128xf32> -> vector<8x128xf32>
    %c4_25 = arith.constant 4 : index
    %c0_26 = arith.constant 0 : index
    %37 = vector.load %arg2[%c4_25, %c0_26] : memref<8x128xf32, #tpu.memory_space<vmem>>, vector<1x128xf32>
    %38 = vector.broadcast %37 : vector<1x128xf32> to vector<8x128xf32>
    %39 = arith.addf %36, %38 : vector<8x128xf32>
    %40 = arith.subf %32, %39 : vector<8x128xf32>
    %41 = arith.addf %33, %39 : vector<8x128xf32>
    %c5 = arith.constant 5 : index
    %c0_27 = arith.constant 0 : index
    %c0_28 = arith.constant 0 : index
    %42 = vector.load %arg1[%c5, %c0_27, %c0_28] : memref<8x128x128xf32, #tpu.memory_space<vmem>>, vector<1x128x128xf32>
    %43 = vector.shape_cast %42 : vector<1x128x128xf32> to vector<128x128xf32>
    %cst_29 = arith.constant dense<0.000000e+00> : vector<8x128xf32>
    %44 = tpu.matmul %40, %43, %cst_29 {dimension_numbers = #tpu.dot_dimension_numbers<[1], [0], [0], [1], [0, 0, 1, 1], [], []>} : vector<8x128xf32>, vector<128x128xf32>, vector<8x128xf32> -> vector<8x128xf32>
    %c5_30 = arith.constant 5 : index
    %c0_31 = arith.constant 0 : index
    %45 = vector.load %arg2[%c5_30, %c0_31] : memref<8x128xf32, #tpu.memory_space<vmem>>, vector<1x128xf32>
    %46 = vector.broadcast %45 : vector<1x128xf32> to vector<8x128xf32>
    %47 = arith.addf %44, %46 : vector<8x128xf32>
    %48 = arith.subf %40, %47 : vector<8x128xf32>
    %49 = arith.addf %41, %47 : vector<8x128xf32>
    %c6 = arith.constant 6 : index
    %c0_32 = arith.constant 0 : index
    %c0_33 = arith.constant 0 : index
    %50 = vector.load %arg1[%c6, %c0_32, %c0_33] : memref<8x128x128xf32, #tpu.memory_space<vmem>>, vector<1x128x128xf32>
    %51 = vector.shape_cast %50 : vector<1x128x128xf32> to vector<128x128xf32>
    %cst_34 = arith.constant dense<0.000000e+00> : vector<8x128xf32>
    %52 = tpu.matmul %48, %51, %cst_34 {dimension_numbers = #tpu.dot_dimension_numbers<[1], [0], [0], [1], [0, 0, 1, 1], [], []>} : vector<8x128xf32>, vector<128x128xf32>, vector<8x128xf32> -> vector<8x128xf32>
    %c6_35 = arith.constant 6 : index
    %c0_36 = arith.constant 0 : index
    %53 = vector.load %arg2[%c6_35, %c0_36] : memref<8x128xf32, #tpu.memory_space<vmem>>, vector<1x128xf32>
    %54 = vector.broadcast %53 : vector<1x128xf32> to vector<8x128xf32>
    %55 = arith.addf %52, %54 : vector<8x128xf32>
    %56 = arith.subf %48, %55 : vector<8x128xf32>
    %57 = arith.addf %49, %55 : vector<8x128xf32>
    %c7 = arith.constant 7 : index
    %c0_37 = arith.constant 0 : index
    %c0_38 = arith.constant 0 : index
    %58 = vector.load %arg1[%c7, %c0_37, %c0_38] : memref<8x128x128xf32, #tpu.memory_space<vmem>>, vector<1x128x128xf32>
    %59 = vector.shape_cast %58 : vector<1x128x128xf32> to vector<128x128xf32>
    %cst_39 = arith.constant dense<0.000000e+00> : vector<8x128xf32>
    %60 = tpu.matmul %56, %59, %cst_39 {dimension_numbers = #tpu.dot_dimension_numbers<[1], [0], [0], [1], [0, 0, 1, 1], [], []>} : vector<8x128xf32>, vector<128x128xf32>, vector<8x128xf32> -> vector<8x128xf32>
    %c7_40 = arith.constant 7 : index
    %c0_41 = arith.constant 0 : index
    %61 = vector.load %arg2[%c7_40, %c0_41] : memref<8x128xf32, #tpu.memory_space<vmem>>, vector<1x128xf32>
    %62 = vector.broadcast %61 : vector<1x128xf32> to vector<8x128xf32>
    %63 = arith.addf %60, %62 : vector<8x128xf32>
    %64 = arith.addf %57, %63 : vector<8x128xf32>
    %c0_42 = arith.constant 0 : index
    %c0_43 = arith.constant 0 : index
    %65 = vector.load %arg3[%c0_42, %c0_43] : memref<8x128xf32, #tpu.memory_space<vmem>>, vector<8x128xf32>
    tpu.vector_store %arg3[%c0_42, %c0_43], %64 {strides = array<i32>} : memref<8x128xf32, #tpu.memory_space<vmem>>, vector<8x128xf32>,
    return
  }
}

</mosaic_0001>

<bundles_post_ra>
// kernel: tpu_custom_call.1
= control target key start
LH: loop header
LB: loop body
LE: loop exit
PB: predicated region body
PF: predicated region fallthrough
CT: control target
= control target key end

     0   :  { %8 = vsyncpa [#allocation3], 0  ;;  %s562_s0 = inlined_call_operand.hbm [shape: f32[8,128], index: 0, kind: input, shape index: {}]   ;;  %s563_s1 = inlined_call_operand.hbm [shape: f32[8,128,128], index: 1, kind: input, shape index: {}]   ;;  %s564_s2 = inlined_call_operand.hbm [shape: f32[8,128], index: 2, kind: input, shape index: {}]   ;;  %s565_s3 = inlined_call_operand.hbm [shape: f32[8,128], index: 3, kind: output, shape index: {}]  }
   0x1   :  { %9 = vsyncpa [#allocation6], 0  ;;  %s26_s14 = sshll.u32 %s563_s1, 4  ;;  %s27_s14 = int_to_ptr.hbm [resolvable:$true] %s26_s14 }
   0x2   :  { %10 = vsyncpa [#allocation4], 0  ;;  %s520_s15 = smov [#allocation5]   ;;  %s16_s19 = sshll.u32 %s562_s0, 4  ;;  %s17_s19 = int_to_ptr.hbm [resolvable:$true] %s16_s19 }
   0x3   :  { %s28_s16 = sshll.u32 %s520_s15, 4  ;;  %s521_s20 = smov 128   ;;  %s29_s16 = int_to_ptr.vmem [resolvable:$true] %s28_s16 }
   0x4   :  { %s522_s21 = smov 8   ;;  %s523_s22 = smov [#allocation2]  }
   0x5   :  { %34 = dma.hbm_to_vmem [thread:$0]  %s27_s14, 16384, %s29_s16, [#allocation6], %s521_s20, %s521_s20, %s522_s21  }
   0x6   :  { %s18_s23 = sshll.u32 %s523_s22, 4  ;;  %s40_s26 = sshll.u32 %s564_s2, 4  ;;  %s19_s23 = int_to_ptr.vmem [resolvable:$true] %s18_s23  ;;  %s41_s26 = int_to_ptr.hbm [resolvable:$true] %s40_s26 }
   0x7   :  { %21 = dma.hbm_to_vmem [thread:$0]  %s17_s19, 128, %s19_s23, [#allocation3]  }
   0x8   :  { %s524_s1 = smov [#allocation7]  }
   0x9   :  { %s42_s27 = sshll.u32 %s524_s1, 4  ;;  %s43_s27 = int_to_ptr.vmem [resolvable:$true] %s42_s27 }
   0xa   :  { %45 = dma.hbm_to_vmem [thread:$0]  %s41_s26, 128, %s43_s27, [#allocation6]  }
   0xb   :  { %514 = dma.done.wait [#allocation3], 128  }
   0xc   :  { %515 = vsyncadd [#allocation3], 4294967168 }
   0xd   :  { %516 = dma.done.wait [#allocation6], 16512  }
   0xe   :  { %517 = vsyncadd [#allocation6], 4294950784  ;;  %v74_v0 = vld [vmem:[#allocation5 + $0x78] sm:$0xff]  ;;  %v73_v1 = vld [vmem:[#allocation5 + $0x70] sm:$0xff]  ;;  %s525_s0 = smov [#allocation8]   ;;  %s393_s30 = sshll.u32 %s565_s3, 4  ;;  %s394_s30 = int_to_ptr.hbm [resolvable:$true] %s393_s30 }
   0xf   :  { %77 = vmatpush.msra.mxu0 %v74_v0  ;;  %v72_v2 = vld [vmem:[#allocation5 + $0x68] sm:$0xff]  ;;  %v71_v3 = vld [vmem:[#allocation5 + $0x60] sm:$0xff]  ;;  %v115_v4 = vld [vmem:[#allocation5 + $0xf8] sm:$0xff]  ;;  %s391_s2 = sshll.u32 %s525_s0, 4  ;;  %s392_s2 = int_to_ptr.vmem [resolvable:$true] %s391_s2 }
  0x10   :  { %v70_v5 = vld [vmem:[#allocation5 + $0x58] sm:$0xff]  ;;  %118 = vmatpush.msra.mxu1 %v115_v4  ;;  %v114_v6 = vld [vmem:[#allocation5 + $0xf0] sm:$0xff]  ;;  %v113_v7 = vld [vmem:[#allocation5 + $0xe8] sm:$0xff] }
  0x11   :  { %78 = vmatpush.msra.mxu0 %v73_v1  ;;  %v69_v8 = vld [vmem:[#allocation5 + $0x50] sm:$0xff]  ;;  %v68_v9 = vld [vmem:[#allocation5 + $0x48] sm:$0xff]  ;;  %v112_v10 = vld [vmem:[#allocation5 + $0xe0] sm:$0xff] }
  0x12   :  { %119 = vmatpush.msra.mxu1 %v114_v6  ;;  %v67_v11 = vld [vmem:[#allocation5 + $0x40] sm:$0xff]  ;;  %v111_v12 = vld [vmem:[#allocation5 + $0xd8] sm:$0xff]  ;;  %v110_v13 = vld [vmem:[#allocation5 + $0xd0] sm:$0xff] }
  0x13   :  { %79 = vmatpush.msra.mxu0 %v72_v2  ;;  %v66_v14 = vld [vmem:[#allocation5 + $0x38] sm:$0xff]  ;;  %v109_v15 = vld [vmem:[#allocation5 + $0xc8] sm:$0xff]  ;;  %v65_v16 = vld [vmem:[#allocation5 + $0x30] sm:$0xff] }
  0x14   :  { %120 = vmatpush.msra.mxu1 %v113_v7  ;;  %v108_v17 = vld [vmem:[#allocation5 + $0xc0] sm:$0xff]  ;;  %v64_v18 = vld [vmem:[#allocation5 + $0x28] sm:$0xff]  ;;  %v107_v19 = vld [vmem:[#allocation5 + $0xb8] sm:$0xff] }
  0x15   :  { %80 = vmatpush.msra.mxu0 %v71_v3  ;;  %v63_v20 = vld [vmem:[#allocation5 + $0x20] sm:$0xff]  ;;  %v106_v21 = vld [vmem:[#allocation5 + $0xb0] sm:$0xff]  ;;  %v62_v22 = vld [vmem:[#allocation5 + $0x18] sm:$0xff] }
  0x16   :  { %121 = vmatpush.msra.mxu1 %v112_v10  ;;  %v105_v23 = vld [vmem:[#allocation5 + $0xa8] sm:$0xff]  ;;  %v61_v24 = vld [vmem:[#allocation5 + $0x10] sm:$0xff]  ;;  %v104_v25 = vld [vmem:[#allocation5 + $0xa0] sm:$0xff] }
  0x17   :  { %81 = vmatpush.msra.mxu0 %v70_v5  ;;  %v60_v26 = vld [vmem:[#allocation5 + $0x8] sm:$0xff]  ;;  %v103_v27 = vld [vmem:[#allocation5 + $0x98] sm:$0xff]  ;;  %v59_v28 = vld [vmem:[#allocation5] sm:$0xff] }
  0x18   :  { %122 = vmatpush.msra.mxu1 %v111_v12  ;;  %v58_v29 = vld [vmem:[#allocation2] sm:$0xff]  ;;  %v102_v30 = vld [vmem:[#allocation5 + $0x90] sm:$0xff]  ;;  %v101_v31 = vld [vmem:[#allocation5 + $0x88] sm:$0xff] }
  0x19   :  { %82 = vmatpush.msra.mxu0 %v69_v8  ;;  %v100_v32 = vld [vmem:[#allocation5 + $0x80] sm:$0xff]  ;;  %v156_v33 = vld [vmem:[#allocation5 + $0x178] sm:$0xff]  ;;  %v155_v34 = vld [vmem:[#allocation5 + $0x170] sm:$0xff] }
  0x1a   :  { %123 = vmatpush.msra.mxu1 %v110_v13  ;;  %159 = vmatpush.msra.mxu2 %v156_v33  ;;  %v154_v35 = vld [vmem:[#allocation5 + $0x168] sm:$0xff]  ;;  %v153_v36 = vld [vmem:[#allocation5 + $0x160] sm:$0xff]  ;;  %v152_v37 = vld [vmem:[#allocation5 + $0x158] sm:$0xff] }
  0x1b   :  { %83 = vmatpush.msra.mxu0 %v68_v9  ;;  %v151_v38 = vld [vmem:[#allocation5 + $0x150] sm:$0xff]  ;;  %v150_v39 = vld [vmem:[#allocation5 + $0x148] sm:$0xff]  ;;  %v149_v40 = vld [vmem:[#allocation5 + $0x140] sm:$0xff] }
  0x1c   :  { %124 = vmatpush.msra.mxu1 %v109_v15  ;;  %160 = vmatpush.msra.mxu2 %v155_v34  ;;  %v148_v41 = vld [vmem:[#allocation5 + $0x138] sm:$0xff]  ;;  %v147_v42 = vld [vmem:[#allocation5 + $0x130] sm:$0xff]  ;;  %v146_v43 = vld [vmem:[#allocation5 + $0x128] sm:$0xff] }
  0x1d   :  { %84 = vmatpush.msra.mxu0 %v67_v11  ;;  %v145_v44 = vld [vmem:[#allocation5 + $0x120] sm:$0xff]  ;;  %v144_v45 = vld [vmem:[#allocation5 + $0x118] sm:$0xff]  ;;  %v143_v50 = vld [vmem:[#allocation5 + $0x110] sm:$0xff] }
  0x1e   :  { %125 = vmatpush.msra.mxu1 %v108_v17  ;;  %161 = vmatpush.msra.mxu2 %v154_v35  ;;  %v410_v46 = vld [vmem:[#allocation7] ss:$0 sm:$0xff]  ;;  %v142_v51 = vld [vmem:[#allocation5 + $0x108] sm:$0xff]  ;;  %v197_v53 = vld [vmem:[#allocation5 + $0x1f8] sm:$0xff] }
  0x1f   :  { %85 = vmatpush.msra.mxu0 %v66_v14  ;;  %v141_v52 = vld [vmem:[#allocation5 + $0x100] sm:$0xff]  ;;  %v196_v54 = vld [vmem:[#allocation5 + $0x1f0] sm:$0xff]  ;;  %200 = vmatpush.msra.mxu3 %v197_v53  ;;  %v195_v55 = vld [vmem:[#allocation5 + $0x1e8] sm:$0xff] }
  0x20   :  { %126 = vmatpush.msra.mxu1 %v107_v19  ;;  %162 = vmatpush.msra.mxu2 %v153_v36  ;;  %v194_v56 = vld [vmem:[#allocation5 + $0x1e0] sm:$0xff]  ;;  %v193_v57 = vld [vmem:[#allocation5 + $0x1d8] sm:$0xff]  ;;  %v192_v58 = vld [vmem:[#allocation5 + $0x1d0] sm:$0xff] }
  0x21   :  { %86 = vmatpush.msra.mxu0 %v65_v16  ;;  %201 = vmatpush.msra.mxu3 %v196_v54  ;;  %v191_v59 = vld [vmem:[#allocation5 + $0x1c8] sm:$0xff]  ;;  %v190_v60 = vld [vmem:[#allocation5 + $0x1c0] sm:$0xff]  ;;  %v189_v61 = vld [vmem:[#allocation5 + $0x1b8] sm:$0xff] }
  0x22   :  { %127 = vmatpush.msra.mxu1 %v106_v21  ;;  %163 = vmatpush.msra.mxu2 %v152_v37  ;;  %v188_v62 = vld [vmem:[#allocation5 + $0x1b0] sm:$0xff]  ;;  %v187_v63 = vld [vmem:[#allocation5 + $0x1a8] sm:$0xff]  ;;  %v186_v0 = vld [vmem:[#allocation5 + $0x1a0] sm:$0xff] }
  0x23   :  { %87 = vmatpush.msra.mxu0 %v64_v18  ;;  %202 = vmatpush.msra.mxu3 %v195_v55  ;;  %v185_v1 = vld [vmem:[#allocation5 + $0x198] sm:$0xff]  ;;  %v411_v2 = vld [vmem:[#allocation7 + $0x1] ss:$0 sm:$0xff]  ;;  %v184_v6 = vld [vmem:[#allocation5 + $0x190] sm:$0xff] }
  0x24   :  { %128 = vmatpush.msra.mxu1 %v105_v23  ;;  %164 = vmatpush.msra.mxu2 %v151_v38  ;;  %v183_v7 = vld [vmem:[#allocation5 + $0x188] sm:$0xff]  ;;  %v182_v8 = vld [vmem:[#allocation5 + $0x180] sm:$0xff]  ;;  %v238_v9 = vld [vmem:[#allocation5 + $0x278] sm:$0xff] }
  0x25   :  { %88 = vmatpush.msra.mxu0 %v63_v20  ;;  %203 = vmatpush.msra.mxu3 %v194_v56  ;;  %v237_v10 = vld [vmem:[#allocation5 + $0x270] sm:$0xff]  ;;  %v236_v11 = vld [vmem:[#allocation5 + $0x268] sm:$0xff]  ;;  %v235_v12 = vld [vmem:[#allocation5 + $0x260] sm:$0xff] }
  0x26   :  { %129 = vmatpush.msra.mxu1 %v104_v25  ;;  %165 = vmatpush.msra.mxu2 %v150_v39  ;;  %v234_v13 = vld [vmem:[#allocation5 + $0x258] sm:$0xff]  ;;  %v233_v14 = vld [vmem:[#allocation5 + $0x250] sm:$0xff]  ;;  %v232_v15 = vld [vmem:[#allocation5 + $0x248] sm:$0xff] }
  0x27   :  { %89 = vmatpush.msra.mxu0 %v62_v22  ;;  %204 = vmatpush.msra.mxu3 %v193_v57  ;;  %v231_v16 = vld [vmem:[#allocation5 + $0x240] sm:$0xff]  ;;  %v230_v17 = vld [vmem:[#allocation5 + $0x238] sm:$0xff]  ;;  %v229_v18 = vld [vmem:[#allocation5 + $0x230] sm:$0xff] }
  0x28   :  { %130 = vmatpush.msra.mxu1 %v103_v27  ;;  %166 = vmatpush.msra.mxu2 %v149_v40  ;;  %v228_v19 = vld [vmem:[#allocation5 + $0x228] sm:$0xff]  ;;  %v227_v20 = vld [vmem:[#allocation5 + $0x220] sm:$0xff]  ;;  %v226_v21 = vld [vmem:[#allocation5 + $0x218] sm:$0xff] }
  0x29   :  { %90 = vmatpush.msra.mxu0 %v61_v24  ;;  %205 = vmatpush.msra.mxu3 %v192_v58  ;;  %v412_v22 = vld [vmem:[#allocation7 + $0x2] ss:$0 sm:$0xff]  ;;  %v277_v33 = vld [vmem:[#allocation5 + $0x2e8] sm:$0xff]  ;;  %v275_v35 = vld [vmem:[#allocation5 + $0x2d8] sm:$0xff] }
  0x2a   :  { %131 = vmatpush.msra.mxu1 %v102_v30  ;;  %167 = vmatpush.msra.mxu2 %v148_v41  ;;  %v223_v30 = vld [vmem:[#allocation5 + $0x200] sm:$0xff]  ;;  %v274_v36 = vld [vmem:[#allocation5 + $0x2d0] sm:$0xff]  ;;  %v273_v37 = vld [vmem:[#allocation5 + $0x2c8] sm:$0xff] }
  0x2b   :  { %91 = vmatpush.msra.mxu0 %v60_v26  ;;  %206 = vmatpush.msra.mxu3 %v191_v59  ;;  %v276_v34 = vld [vmem:[#allocation5 + $0x2e0] sm:$0xff]  ;;  %v271_v39 = vld [vmem:[#allocation5 + $0x2b8] sm:$0xff]  ;;  %v270_v40 = vld [vmem:[#allocation5 + $0x2b0] sm:$0xff] }
  0x2c   :  { %132 = vmatpush.msra.mxu1 %v101_v31  ;;  %168 = vmatpush.msra.mxu2 %v147_v42  ;;  %v279_v31 = vld [vmem:[#allocation5 + $0x2f8] sm:$0xff]  ;;  %v272_v38 = vld [vmem:[#allocation5 + $0x2c0] sm:$0xff]  ;;  %v269_v41 = vld [vmem:[#allocation5 + $0x2a8] sm:$0xff] }
  0x2d   :  { %92 = vmatpush.msra.mxu0 %v59_v28  ;;  %207 = vmatpush.msra.mxu3 %v190_v60  ;;  %v225_v28 = vld [vmem:[#allocation5 + $0x210] sm:$0xff]  ;;  %v268_v42 = vld [vmem:[#allocation5 + $0x2a0] sm:$0xff]  ;;  %v318_v54 = vld [vmem:[#allocation5 + $0x368] sm:$0xff] }
  0x2e   :  { %93 = vmatmul.f32.vlgmr.msra.gmra.mxu0 %v58_v29  ;;  %133 = vmatpush.msra.mxu1 %v100_v32  ;;  %v278_v32 = vld [vmem:[#allocation5 + $0x2f0] sm:$0xff]  ;;  %v317_v55 = vld [vmem:[#allocation5 + $0x360] sm:$0xff]  ;;  %v316_v56 = vld [vmem:[#allocation5 + $0x358] sm:$0xff] }
  0x2f   :  { %169 = vmatpush.msra.mxu2 %v146_v43  ;;  %208 = vmatpush.msra.mxu3 %v189_v61  ;;  %v267_v43 = vld [vmem:[#allocation5 + $0x298] sm:$0xff]  ;;  %v319_v53 = vld [vmem:[#allocation5 + $0x370] sm:$0xff]  ;;  %v314_v58 = vld [vmem:[#allocation5 + $0x348] sm:$0xff] }
  0x30   :  { %241 = vmatpush.msrb.mxu0 %v238_v9  ;;  %282 = vmatpush.msrb.mxu1 %v279_v31  ;;  %v315_v57 = vld [vmem:[#allocation5 + $0x350] sm:$0xff]  ;;  %v313_v59 = vld [vmem:[#allocation5 + $0x340] sm:$0xff]  ;;  %v312_v60 = vld [vmem:[#allocation5 + $0x338] sm:$0xff] }
  0x31   :  { %170 = vmatpush.msra.mxu2 %v145_v44  ;;  %209 = vmatpush.msra.mxu3 %v188_v62  ;;  %v413_v44 = vld [vmem:[#allocation7 + $0x3] ss:$0 sm:$0xff]  ;;  %v311_v61 = vld [vmem:[#allocation5 + $0x330] sm:$0xff]  ;;  %v310_v62 = vld [vmem:[#allocation5 + $0x328] sm:$0xff] }
  0x32   :  { %242 = vmatpush.msrb.mxu0 %v237_v10  ;;  %283 = vmatpush.msrb.mxu1 %v278_v32  ;;  %v361_v9 = vld [vmem:[#allocation5 + $0x3f8] sm:$0xff]  ;;  %v360_v10 = vld [vmem:[#allocation5 + $0x3f0] sm:$0xff] }
  0x33   :  { %171 = vmatpush.msra.mxu2 %v144_v45  ;;  %210 = vmatpush.msra.mxu3 %v187_v63  ;;  %v309_v63 = vld [vmem:[#allocation5 + $0x320] sm:$0xff] }
  0x34   :  { %243 = vmatpush.msrb.mxu0 %v236_v11  ;;  %284 = vmatpush.msrb.mxu1 %v277_v33  ;;  %v359_v11 = vld [vmem:[#allocation5 + $0x3e8] sm:$0xff] }
  0x35   :  { %172 = vmatpush.msra.mxu2 %v143_v50  ;;  %211 = vmatpush.msra.mxu3 %v186_v0  ;;  %v265_v50 = vld [vmem:[#allocation5 + $0x288] sm:$0xff]  ;;  %v308_v0 = vld [vmem:[#allocation5 + $0x318] sm:$0xff] }
  0x36   :  { %244 = vmatpush.msrb.mxu0 %v235_v12  ;;  %285 = vmatpush.msrb.mxu1 %v276_v34  ;;  %v358_v12 = vld [vmem:[#allocation5 + $0x3e0] sm:$0xff] }
  0x37   :  { %173 = vmatpush.msra.mxu2 %v142_v51  ;;  %212 = vmatpush.msra.mxu3 %v185_v1  ;;  %v264_v51 = vld [vmem:[#allocation5 + $0x280] sm:$0xff] }
  0x38   :  { %245 = vmatpush.msrb.mxu0 %v234_v13  ;;  %286 = vmatpush.msrb.mxu1 %v275_v35  ;;  %v414_v1 = vld [vmem:[#allocation7 + $0x4] ss:$0 sm:$0xff]  ;;  %v357_v13 = vld [vmem:[#allocation5 + $0x3d8] sm:$0xff]  ;;  %v417_v35 = vld [vmem:[#allocation7 + $0x7] ss:$0 sm:$0xff] }
  0x39   :  { %174 = vmatpush.msra.mxu2 %v141_v52  ;;  %213 = vmatpush.msra.mxu3 %v184_v6  ;;  %v320_v52 = vld [vmem:[#allocation5 + $0x378] sm:$0xff]  ;;  %v307_v6 = vld [vmem:[#allocation5 + $0x310] sm:$0xff] }
  0x3a   :  { %246 = vmatpush.msrb.mxu0 %v233_v14  ;;  %287 = vmatpush.msrb.mxu1 %v274_v36  ;;  %v356_v14 = vld [vmem:[#allocation5 + $0x3d0] sm:$0xff] }
  0x3b   :  { %214 = vmatpush.msra.mxu3 %v183_v7  ;;  %323 = vmatpush.msrb.mxu2 %v320_v52  ;;  %v306_v7 = vld [vmem:[#allocation5 + $0x308] sm:$0xff] }
  0x3c   :  { %247 = vmatpush.msrb.mxu0 %v232_v15  ;;  %288 = vmatpush.msrb.mxu1 %v273_v37  ;;  %v355_v15 = vld [vmem:[#allocation5 + $0x3c8] sm:$0xff] }
  0x3d   :  { %215 = vmatpush.msra.mxu3 %v182_v8  ;;  %324 = vmatpush.msrb.mxu2 %v319_v53  ;;  %v305_v8 = vld [vmem:[#allocation5 + $0x300] sm:$0xff] }
  0x3e   :  { %248 = vmatpush.msrb.mxu0 %v231_v16  ;;  %289 = vmatpush.msrb.mxu1 %v272_v38  ;;  %v354_v16 = vld [vmem:[#allocation5 + $0x3c0] sm:$0xff] }
  0x3f   :  { %325 = vmatpush.msrb.mxu2 %v318_v54  ;;  %364 = vmatpush.msrb.mxu3 %v361_v9 }
  0x40   :  { %249 = vmatpush.msrb.mxu0 %v230_v17  ;;  %290 = vmatpush.msrb.mxu1 %v271_v39  ;;  %v353_v17 = vld [vmem:[#allocation5 + $0x3b8] sm:$0xff] }
  0x41   :  { %326 = vmatpush.msrb.mxu2 %v317_v55  ;;  %365 = vmatpush.msrb.mxu3 %v360_v10 }
  0x42   :  { %250 = vmatpush.msrb.mxu0 %v229_v18  ;;  %291 = vmatpush.msrb.mxu1 %v270_v40  ;;  %v352_v18 = vld [vmem:[#allocation5 + $0x3b0] sm:$0xff] }
  0x43   :  { %327 = vmatpush.msrb.mxu2 %v316_v56  ;;  %366 = vmatpush.msrb.mxu3 %v359_v11 }
  0x44   :  { %251 = vmatpush.msrb.mxu0 %v228_v19  ;;  %292 = vmatpush.msrb.mxu1 %v269_v41  ;;  %v351_v19 = vld [vmem:[#allocation5 + $0x3a8] sm:$0xff] }
  0x45   :  { %328 = vmatpush.msrb.mxu2 %v315_v57  ;;  %367 = vmatpush.msrb.mxu3 %v358_v12 }
  0x46   :  { %252 = vmatpush.msrb.mxu0 %v227_v20  ;;  %293 = vmatpush.msrb.mxu1 %v268_v42  ;;  %v350_v20 = vld [vmem:[#allocation5 + $0x3a0] sm:$0xff] }
  0x47   :  { %329 = vmatpush.msrb.mxu2 %v314_v58  ;;  %368 = vmatpush.msrb.mxu3 %v357_v13 }
  0x48   :  { %253 = vmatpush.msrb.mxu0 %v226_v21  ;;  %294 = vmatpush.msrb.mxu1 %v267_v43  ;;  %v349_v21 = vld [vmem:[#allocation5 + $0x398] sm:$0xff] }
  0x49   :  { %330 = vmatpush.msrb.mxu2 %v313_v59  ;;  %369 = vmatpush.msrb.mxu3 %v356_v14 }
  0x4a   :  { %254 = vmatpush.msrb.mxu0 %v225_v28  ;;  %v347_v28 = vld [vmem:[#allocation5 + $0x388] sm:$0xff] }
  0x4b   :  { %331 = vmatpush.msrb.mxu2 %v312_v60  ;;  %370 = vmatpush.msrb.mxu3 %v355_v15 }
  0x4d   :  { %332 = vmatpush.msrb.mxu2 %v311_v61  ;;  %371 = vmatpush.msrb.mxu3 %v354_v16 }
  0x4f   :  { %333 = vmatpush.msrb.mxu2 %v310_v62  ;;  %372 = vmatpush.msrb.mxu3 %v353_v17 }
  0x51   :  { %334 = vmatpush.msrb.mxu2 %v309_v63  ;;  %373 = vmatpush.msrb.mxu3 %v352_v18 }
  0x53   :  { %335 = vmatpush.msrb.mxu2 %v308_v0  ;;  %374 = vmatpush.msrb.mxu3 %v351_v19 }
  0x55   :  { %336 = vmatpush.msrb.mxu2 %v307_v6  ;;  %375 = vmatpush.msrb.mxu3 %v350_v20 }
  0x57   :  { %337 = vmatpush.msrb.mxu2 %v306_v7  ;;  %376 = vmatpush.msrb.mxu3 %v349_v21 }
  0x59   :  { %338 = vmatpush.msrb.mxu2 %v305_v8 }
  0xab   :  { %v94_v47 = vpop.f32.mrf.mxu0 }
  0xac   :  { %v555_v48 = vadd.f32 %v410_v46, %v94_v47 }
  0xae   :  { %v97_v49 = vsub.f32 %v58_v29, %v555_v48  ;;  %v224_v29 = vld [vmem:[#allocation5 + $0x208] sm:$0xff] }
  0xaf   :  { %255 = vmatpush.msrb.mxu0 %v224_v29  ;;  %v346_v29 = vld [vmem:[#allocation5 + $0x380] sm:$0xff] }
  0xb0   :  { %134 = vmatmul.f32.vlgmr.msra.gmra.mxu1 %v97_v49 }
  0xb1   :  { %256 = vmatpush.msrb.mxu0 %v223_v30  ;;  %v416_v30 = vld [vmem:[#allocation7 + $0x6] ss:$0 sm:$0xff] }
 0x12d   :  { %v135_v3 = vpop.f32.mrf.mxu1 }
 0x12e   :  { %v136_v4 = vadd.f32 %v411_v2, %v135_v3 }
 0x130   :  { %v138_v5 = vsub.f32 %v97_v49, %v136_v4  ;;  %v139_v24 = vadd.f32 %v136_v4, %v555_v48  ;;  %v266_v49 = vld [vmem:[#allocation5 + $0x290] sm:$0xff] }
 0x131   :  { %295 = vmatpush.msrb.mxu1 %v266_v49 }
 0x132   :  { %175 = vmatmul.f32.vlgmr.msra.gmra.mxu2 %v138_v5 }
 0x133   :  { %296 = vmatpush.msrb.mxu1 %v265_v50 }
 0x135   :  { %297 = vmatpush.msrb.mxu1 %v264_v51 }
 0x1b5   :  { %v176_v23 = vpop.f32.mrf.mxu2 }
 0x1b6   :  { %v177_v25 = vadd.f32 %v412_v22, %v176_v23  ;;  %v415_v22 = vld [vmem:[#allocation7 + $0x5] ss:$0 sm:$0xff] }
 0x1b8   :  { %v180_v26 = vadd.f32 %v177_v25, %v139_v24  ;;  %v179_v27 = vsub.f32 %v138_v5, %v177_v25 }
 0x1ba   :  { %216 = vmatmul.f32.vlgmr.msra.gmra.mxu3 %v179_v27 }
 0x23d   :  { %v217_v45 = vpop.f32.mrf.mxu3 }
 0x23e   :  { %v218_v46 = vadd.f32 %v413_v44, %v217_v45 }
 0x240   :  { %v220_v47 = vsub.f32 %v179_v27, %v218_v46  ;;  %v221_v48 = vadd.f32 %v218_v46, %v180_v26  ;;  %v348_v27 = vld [vmem:[#allocation5 + $0x390] sm:$0xff] }
 0x241   :  { %377 = vmatpush.msrb.mxu3 %v348_v27 }
 0x242   :  { %257 = vmatmul.f32.vlgmr.msrb.gmra.mxu0 %v220_v47 }
 0x243   :  { %378 = vmatpush.msrb.mxu3 %v347_v28 }
 0x245   :  { %379 = vmatpush.msrb.mxu3 %v346_v29 }
 0x2bf   :  { %v258_v2 = vpop.f32.mrf.mxu0 }
 0x2c0   :  { %v259_v3 = vadd.f32 %v414_v1, %v258_v2 }
 0x2c2   :  { %v261_v4 = vsub.f32 %v220_v47, %v259_v3  ;;  %v262_v5 = vadd.f32 %v259_v3, %v221_v48 }
 0x2c4   :  { %298 = vmatmul.f32.vlgmr.msrb.gmra.mxu1 %v261_v4 }
 0x341   :  { %v299_v23 = vpop.f32.mrf.mxu1 }
 0x342   :  { %v300_v24 = vadd.f32 %v415_v22, %v299_v23 }
 0x344   :  { %v302_v25 = vsub.f32 %v261_v4, %v300_v24  ;;  %v303_v26 = vadd.f32 %v300_v24, %v262_v5 }
 0x346   :  { %339 = vmatmul.f32.vlgmr.msrb.gmra.mxu2 %v302_v25 }
 0x3c9   :  { %v340_v31 = vpop.f32.mrf.mxu2 }
 0x3ca   :  { %v341_v32 = vadd.f32 %v416_v30, %v340_v31 }
 0x3cc   :  { %v343_v33 = vsub.f32 %v302_v25, %v341_v32  ;;  %v344_v34 = vadd.f32 %v341_v32, %v303_v26 }
 0x3ce   :  { %380 = vmatmul.f32.vlgmr.msrb.gmra.mxu3 %v343_v33 }
 0x451   :  { %v381_v36 = vpop.f32.mrf.mxu3 }
 0x452   :  { %v382_v37 = vadd.f32 %v417_v35, %v381_v36 }
 0x454   :  { %v384_v38 = vadd.f32 %v382_v37, %v344_v34 }
 0x456   :  { %385 = vst [vmem:[#allocation8] sm:$0xff] %v384_v38 }
 0x457   :  { %396 = dma.vmem_to_hbm [thread:$0]  %s392_s2, 128, %s394_s30, [#allocation4]  }
 0x458   :  { %518 = dma.done.wait [#allocation4], 128  }
 0x459   :  { %519 = vsyncadd [#allocation4], 4294967168 }
 0x45a   :  { %401 = vsyncpa [#allocation3], 1 }
 0x45b   :  { %402 = vsyncpa [#allocation6], 1 }
 0x45c   :  { %403 = vsyncpa [#allocation4], 1 }

</bundles_post_ra>
